<compile_context>
chip_gen: v6e
topology: v6e:2x2x1
jax: 0.10.0
libtpu: 0.0.40
codegen_flags: <defaults>
</compile_context>

<pallas_src>
import math

import jax
import jax.numpy as jnp
from jax import lax
from jax.experimental import pallas as pl
from jax.experimental.pallas import tpu as pltpu

_INV_SQRT2 = 1.0 / math.sqrt(2.0)


def _gelu_exact(x):
    # PyTorch F.gelu default is the exact (erf) formulation; keep it in f32.
    return 0.5 * x * (1.0 + lax.erf(x * _INV_SQRT2))


def _round_up(n, m):
    return ((n + m - 1) // m) * m


def _mlp_kernel(x_ref, wg_ref, bg_ref, wu_ref, bu_ref, wd_ref, bd_ref,
                o_ref, acc_ref):
    j = pl.program_id(1)

    @pl.when(j == 0)
    def _():
        acc_ref[...] = jnp.zeros_like(acc_ref)

    x = x_ref[...]                                      # (TM, hidden) bf16

    # gate / up partials for this TN slice of the intermediate dim.
    # bf16 operands on the MXU, f32 accumulation; bias added per-TN slice.
    gate = jnp.dot(x, wg_ref[...], preferred_element_type=jnp.float32) + bg_ref[...]
    up = jnp.dot(x, wu_ref[...], preferred_element_type=jnp.float32) + bu_ref[...]

    # GELU + elementwise fuse in f32, then back to bf16 for the down_proj MXU.
    fuse = (_gelu_exact(gate) * up).astype(x.dtype)     # (TM, TN) bf16

    # Accumulate this slice's down_proj contribution into the f32 accumulator.
    acc_ref[...] += jnp.dot(fuse, wd_ref[...], preferred_element_type=jnp.float32)

    # Final reduction step: add bd exactly once, cast, and store lane-dense.
    @pl.when(j == pl.num_programs(1) - 1)
    def _():
        o_ref[...] = (acc_ref[...] + bd_ref[...]).astype(o_ref.dtype)


def mlp_forward(x, params, *, tm=256, tn=512):
    """x: [tokens, hidden] bf16.  params: dict of bf16 weights (pre-transposed
    to [in_features, out_features]) and f32 biases shaped [1, out_features]."""
    tokens, hidden = x.shape
    inter = params["wg"].shape[1]

    assert hidden % 128 == 0, "hidden must be a multiple of 128 (lane-dense)"
    tn = min(tn, inter)
    assert inter % tn == 0 and tn % 128 == 0, "intermediate/TN must be 128-aligned"

    # TM: multiple of 16 (bf16 sublane packing); pad tokens to a TM multiple.
    tm = min(tm, _round_up(tokens, 16))
    tokens_p = _round_up(tokens, tm)
    if tokens_p != tokens:
        x = jnp.pad(x, ((0, tokens_p - tokens), (0, 0)))

    grid = (tokens_p // tm, inter // tn)

    flops = 2 * tokens_p * hidden * inter * 3          # three matmuls
    bytes_accessed = (
        x.size * x.dtype.itemsize
        + sum(int(p.size) * p.dtype.itemsize for p in params.values())
        + tokens_p * hidden * x.dtype.itemsize)        # output writeback

    out = pl.pallas_call(
        _mlp_kernel,
        out_shape=jax.ShapeDtypeStruct((tokens_p, hidden), x.dtype),
        grid_spec=pltpu.PrefetchScalarGridSpec(
            num_scalar_prefetch=0,
            grid=grid,
            in_specs=[
                pl.BlockSpec((tm, hidden), lambda i, j: (i, 0)),   # x
                pl.BlockSpec((hidden, tn), lambda i, j: (0, j)),   # wg
                pl.BlockSpec((1, tn),      lambda i, j: (0, j)),   # bg
                pl.BlockSpec((hidden, tn), lambda i, j: (0, j)),   # wu
                pl.BlockSpec((1, tn),      lambda i, j: (0, j)),   # bu
                pl.BlockSpec((tn, hidden), lambda i, j: (j, 0)),   # wd
                pl.BlockSpec((1, hidden),  lambda i, j: (0, 0)),   # bd
            ],
            out_specs=pl.BlockSpec((tm, hidden), lambda i, j: (i, 0)),
            scratch_shapes=[pltpu.VMEM((tm, hidden), jnp.float32)],
        ),
        compiler_params=pltpu.CompilerParams(
            dimension_semantics=("parallel", "arbitrary"),
            # Conservative scoped-VMEM limit that is safe on v5e/v6e (128 MiB
            # physical) and v7x (64 MiB physical) while well above defaults.
            vmem_limit_bytes=48 * 1024 * 1024,
        ),
        cost_estimate=pl.CostEstimate(
            flops=flops,
            transcendentals=tokens_p * inter,          # erf per gate element
            bytes_accessed=bytes_accessed),
    )(x, params["wg"], params["bg"], params["wu"], params["bu"],
      params["wd"], params["bd"])

    return out[:tokens]


def init_params(key, hidden_size, intermediate_size):
    """Deterministic init mimicking nn.Linear (uniform +/- 1/sqrt(fan_in)).
    Weights stored pre-transposed [in, out] in bf16; biases [1, out] in f32."""
    ks = jax.random.split(key, 6)

    def lin(kw, kb, fan_in, fan_out):
        bound = 1.0 / math.sqrt(fan_in)
        w = jax.random.uniform(kw, (fan_in, fan_out), jnp.float32, -bound, bound)
        b = jax.random.uniform(kb, (1, fan_out), jnp.float32, -bound, bound)
        return w.astype(jnp.bfloat16), b

    wg, bg = lin(ks[0], ks[1], hidden_size, intermediate_size)
    wu, bu = lin(ks[2], ks[3], hidden_size, intermediate_size)
    wd, bd = lin(ks[4], ks[5], intermediate_size, hidden_size)
    return {"wg": wg, "bg": bg, "wu": wu, "bu": bu, "wd": wd, "bd": bd}


def mlp_reference(x, p):
    """Pure-JAX reference mirroring the kernel's dtype pipeline."""
    gate = jnp.dot(x, p["wg"], preferred_element_type=jnp.float32) + p["bg"]
    up = jnp.dot(x, p["wu"], preferred_element_type=jnp.float32) + p["bu"]
    fuse = (_gelu_exact(gate) * up).astype(x.dtype)
    out = jnp.dot(fuse, p["wd"], preferred_element_type=jnp.float32) + p["bd"]
    return out.astype(x.dtype)


if __name__ == "__main__":
    # Small but lane-dense shapes (hidden/intermediate multiples of 128).
    batch, seq, hidden, intermediate = 2, 8, 128, 256

    key = jax.random.PRNGKey(0)
    kx, kp = jax.random.split(key)
    x = jax.random.normal(kx, (batch, seq, hidden), jnp.float32).astype(jnp.bfloat16)
    params = init_params(kp, hidden, intermediate)

    x2d = x.reshape(batch * seq, hidden)               # [tokens, hidden]
    # tn=128 -> two reduction steps over the intermediate dim, exercising the
    # accumulator init / finalize path.
    out2d = mlp_forward(x2d, params, tm=16, tn=128)
    out = out2d.reshape(batch, seq, hidden)
    jax.block_until_ready(out)

    ref = mlp_reference(x2d, params).reshape(batch, seq, hidden)
    err = jnp.max(jnp.abs(out.astype(jnp.float32) - ref.astype(jnp.float32)))
    assert err < 1e-2, f"mismatch vs reference: max abs err {err}"

    print("KERNEL_OK")
</pallas_src>

<mosaic_0001>
module attributes {stable_mosaic.version = 11 : i64} {
  func.func @_mlp_kernel(%arg0: i32, %arg1: i32, %arg2: memref<16x128xbf16, #tpu.memory_space<vmem>>, %arg3: memref<128x128xbf16, #tpu.memory_space<vmem>>, %arg4: memref<1x128xf32, #tpu.memory_space<vmem>>, %arg5: memref<128x128xbf16, #tpu.memory_space<vmem>>, %arg6: memref<1x128xf32, #tpu.memory_space<vmem>>, %arg7: memref<128x128xbf16, #tpu.memory_space<vmem>>, %arg8: memref<1x128xf32, #tpu.memory_space<vmem>>, %arg9: memref<16x128xbf16, #tpu.memory_space<vmem>>, %arg10: memref<16x128xf32, #tpu.memory_space<vmem>>) attributes {dimension_semantics = [#tpu.dimension_semantics<parallel>, #tpu.dimension_semantics<arbitrary>], iteration_bounds = array<i64: 1, 2>, scalar_prefetch = 0 : i64, scratch_operands = 1 : i64, tpu.core_type = #tpu.core_type<tc>, window_params = [{transform_indices = @transform_0, window_bounds = array<i64: 16, 128>}, {transform_indices = @transform_1, window_bounds = array<i64: 128, 128>}, {transform_indices = @transform_2, window_bounds = array<i64: 1, 128>}, {transform_indices = @transform_3, window_bounds = array<i64: 128, 128>}, {transform_indices = @transform_4, window_bounds = array<i64: 1, 128>}, {transform_indices = @transform_5, window_bounds = array<i64: 128, 128>}, {pipeline_mode = #tpu.pipeline_mode<synchronous>, transform_indices = @transform_6, window_bounds = array<i64: 1, 128>}, {transform_indices = @transform_7, window_bounds = array<i64: 16, 128>}]} {
    %c0_i32 = arith.constant 0 : i32
    %0 = arith.cmpi eq, %arg1, %c0_i32 : i32
    %1 = arith.extui %0 : i1 to i32
    %c0_i32_0 = arith.constant 0 : i32
    %2 = arith.cmpi ne, %1, %c0_i32_0 : i32
    scf.if %2 {
      %cst_22 = arith.constant 0.000000e+00 : f32
      %32 = vector.broadcast %cst_22 : f32 to vector<16x128xf32>
      %c0_23 = arith.constant 0 : index
      %c0_24 = arith.constant 0 : index
      %33 = vector.load %arg10[%c0_23, %c0_24] : memref<16x128xf32, #tpu.memory_space<vmem>>, vector<16x128xf32>
      tpu.vector_store %arg10[%c0_23, %c0_24], %32 {strides = array<i32>} : memref<16x128xf32, #tpu.memory_space<vmem>>, vector<16x128xf32>,
    } else {
    }
    %c0 = arith.constant 0 : index
    %c0_1 = arith.constant 0 : index
    %3 = vector.load %arg2[%c0, %c0_1] : memref<16x128xbf16, #tpu.memory_space<vmem>>, vector<16x128xbf16>
    %c0_2 = arith.constant 0 : index
    %c0_3 = arith.constant 0 : index
    %4 = vector.load %arg3[%c0_2, %c0_3] : memref<128x128xbf16, #tpu.memory_space<vmem>>, vector<128x128xbf16>
    %cst = arith.constant dense<0.000000e+00> : vector<16x128xf32>
    %5 = tpu.matmul %3, %4, %cst {dimension_numbers = #tpu.dot_dimension_numbers<[1], [0], [0], [1], [0, 0, 1, 1], [], []>} : vector<16x128xbf16>, vector<128x128xbf16>, vector<16x128xf32> -> vector<16x128xf32>
    %c0_4 = arith.constant 0 : index
    %c0_5 = arith.constant 0 : index
    %6 = vector.load %arg4[%c0_4, %c0_5] : memref<1x128xf32, #tpu.memory_space<vmem>>, vector<1x128xf32>
    %7 = vector.broadcast %6 : vector<1x128xf32> to vector<16x128xf32>
    %8 = arith.addf %5, %7 : vector<16x128xf32>
    %c0_6 = arith.constant 0 : index
    %c0_7 = arith.constant 0 : index
    %9 = vector.load %arg5[%c0_6, %c0_7] : memref<128x128xbf16, #tpu.memory_space<vmem>>, vector<128x128xbf16>
    %cst_8 = arith.constant dense<0.000000e+00> : vector<16x128xf32>
    %10 = tpu.matmul %3, %9, %cst_8 {dimension_numbers = #tpu.dot_dimension_numbers<[1], [0], [0], [1], [0, 0, 1, 1], [], []>} : vector<16x128xbf16>, vector<128x128xbf16>, vector<16x128xf32> -> vector<16x128xf32>
    %c0_9 = arith.constant 0 : index
    %c0_10 = arith.constant 0 : index
    %11 = vector.load %arg6[%c0_9, %c0_10] : memref<1x128xf32, #tpu.memory_space<vmem>>, vector<1x128xf32>
    %12 = vector.broadcast %11 : vector<1x128xf32> to vector<16x128xf32>
    %13 = arith.addf %10, %12 : vector<16x128xf32>
    %cst_11 = arith.constant 5.000000e-01 : f32
    %14 = vector.broadcast %cst_11 : f32 to vector<16x128xf32>
    %15 = arith.mulf %14, %8 : vector<16x128xf32>
    %cst_12 = arith.constant 0.707106769 : f32
    %16 = vector.broadcast %cst_12 : f32 to vector<16x128xf32>
    %17 = arith.mulf %8, %16 : vector<16x128xf32>
    %18 = math.erf %17 : vector<16x128xf32>
    %cst_13 = arith.constant 1.000000e+00 : f32
    %19 = vector.broadcast %cst_13 : f32 to vector<16x128xf32>
    %20 = arith.addf %19, %18 : vector<16x128xf32>
    %21 = arith.mulf %15, %20 : vector<16x128xf32>
    %22 = arith.mulf %21, %13 : vector<16x128xf32>
    %23 = arith.truncf %22 : vector<16x128xf32> to vector<16x128xbf16>
    %c0_14 = arith.constant 0 : index
    %c0_15 = arith.constant 0 : index
    %24 = vector.load %arg10[%c0_14, %c0_15] : memref<16x128xf32, #tpu.memory_space<vmem>>, vector<16x128xf32>
    %c0_16 = arith.constant 0 : index
    %c0_17 = arith.constant 0 : index
    %25 = vector.load %arg7[%c0_16, %c0_17] : memref<128x128xbf16, #tpu.memory_space<vmem>>, vector<128x128xbf16>
    %cst_18 = arith.constant dense<0.000000e+00> : vector<16x128xf32>
    %26 = tpu.matmul %23, %25, %cst_18 {dimension_numbers = #tpu.dot_dimension_numbers<[1], [0], [0], [1], [0, 0, 1, 1], [], []>} : vector<16x128xbf16>, vector<128x128xbf16>, vector<16x128xf32> -> vector<16x128xf32>
    %27 = arith.addf %24, %26 : vector<16x128xf32>
    %c0_19 = arith.constant 0 : index
    %c0_20 = arith.constant 0 : index
    %28 = vector.load %arg10[%c0_19, %c0_20] : memref<16x128xf32, #tpu.memory_space<vmem>>, vector<16x128xf32>
    tpu.vector_store %arg10[%c0_19, %c0_20], %27 {strides = array<i32>} : memref<16x128xf32, #tpu.memory_space<vmem>>, vector<16x128xf32>,
    %c1_i32 = arith.constant 1 : i32
    %29 = arith.cmpi eq, %arg1, %c1_i32 : i32
    %30 = arith.extui %29 : i1 to i32
    %c0_i32_21 = arith.constant 0 : i32
    %31 = arith.cmpi ne, %30, %c0_i32_21 : i32
    scf.if %31 {
      %c0_22 = arith.constant 0 : index
      %c0_23 = arith.constant 0 : index
      %32 = vector.load %arg10[%c0_22, %c0_23] : memref<16x128xf32, #tpu.memory_space<vmem>>, vector<16x128xf32>
      %c0_24 = arith.constant 0 : index
      %c0_25 = arith.constant 0 : index
      %33 = vector.load %arg8[%c0_24, %c0_25] : memref<1x128xf32, #tpu.memory_space<vmem>>, vector<1x128xf32>
      %34 = vector.broadcast %33 : vector<1x128xf32> to vector<16x128xf32>
      %35 = arith.addf %32, %34 : vector<16x128xf32>
      %36 = arith.truncf %35 : vector<16x128xf32> to vector<16x128xbf16>
      %c0_26 = arith.constant 0 : index
      %c0_27 = arith.constant 0 : index
      %37 = vector.load %arg9[%c0_26, %c0_27] : memref<16x128xbf16, #tpu.memory_space<vmem>>, vector<16x128xbf16>
      tpu.vector_store %arg9[%c0_26, %c0_27], %36 {strides = array<i32>} : memref<16x128xbf16, #tpu.memory_space<vmem>>, vector<16x128xbf16>,
    } else {
    }
    return
  }
  func.func @transform_0(%arg0: i32, %arg1: i32) -> (i32, i32) {
    %c0_i32 = arith.constant 0 : i32
    %c0_i32_0 = arith.constant 0 : i32
    return %arg0, %c0_i32 : i32, i32
  }
  func.func @transform_1(%arg0: i32, %arg1: i32) -> (i32, i32) {
    %c0_i32 = arith.constant 0 : i32
    %c0_i32_0 = arith.constant 0 : i32
    return %c0_i32, %arg1 : i32, i32
  }
  func.func @transform_2(%arg0: i32, %arg1: i32) -> (i32, i32) {
    %c0_i32 = arith.constant 0 : i32
    %c0_i32_0 = arith.constant 0 : i32
    return %c0_i32, %arg1 : i32, i32
  }
  func.func @transform_3(%arg0: i32, %arg1: i32) -> (i32, i32) {
    %c0_i32 = arith.constant 0 : i32
    %c0_i32_0 = arith.constant 0 : i32
    return %c0_i32, %arg1 : i32, i32
  }
  func.func @transform_4(%arg0: i32, %arg1: i32) -> (i32, i32) {
    %c0_i32 = arith.constant 0 : i32
    %c0_i32_0 = arith.constant 0 : i32
    return %c0_i32, %arg1 : i32, i32
  }
  func.func @transform_5(%arg0: i32, %arg1: i32) -> (i32, i32) {
    %c0_i32 = arith.constant 0 : i32
    %c0_i32_0 = arith.constant 0 : i32
    return %arg1, %c0_i32 : i32, i32
  }
  func.func @transform_6(%arg0: i32, %arg1: i32) -> (i32, i32) {
    %c0_i32 = arith.constant 0 : i32
    %c0_i32_0 = arith.constant 0 : i32
    %c0_i32_1 = arith.constant 0 : i32
    return %c0_i32, %c0_i32_0 : i32, i32
  }
  func.func @transform_7(%arg0: i32, %arg1: i32) -> (i32, i32) {
    %c0_i32 = arith.constant 0 : i32
    %c0_i32_0 = arith.constant 0 : i32
    return %arg0, %c0_i32 : i32, i32
  }
}

</mosaic_0001>

<bundles_post_ra>
// kernel: tpu_custom_call.1
= control target key start
LH: loop header
LB: loop body
LE: loop exit
PB: predicated region body
PF: predicated region fallthrough
CT: control target
= control target key end

     0   :  { %s1769_s0 = inlined_call_operand.hbm [shape: bf16[16,128], index: 0, kind: input, shape index: {}]   ;;  %s1770_s1 = inlined_call_operand.hbm [shape: bf16[128,256], index: 1, kind: input, shape index: {}]   ;;  %s1771_s2 = inlined_call_operand.vmem [shape: f32[1,256], index: 2, kind: input, shape index: {}]   ;;  %s1772_s3 = inlined_call_operand.hbm [shape: bf16[128,256], index: 3, kind: input, shape index: {}]   ;;  %s1773_s4 = inlined_call_operand.vmem [shape: f32[1,256], index: 4, kind: input, shape index: {}]   ;;  %s1774_s5 = inlined_call_operand.hbm [shape: bf16[256,128], index: 5, kind: input, shape index: {}]   ;;  %s1775_s6 = inlined_call_operand.vmem [shape: f32[1,128], index: 6, kind: input, shape index: {}]   ;;  %s1776_s7 = inlined_call_operand.hbm [shape: bf16[16,128], index: 7, kind: output, shape index: {}]  }
   0x1   :  { %1782 = sst [smem:[#allocation17_spill]] %s1770_s1 }
   0x2   :  { %1783 = sst [smem:[#allocation18_spill]] %s1772_s3 }
   0x3   :  { %12 = vsyncpa [#allocation4], 0 }
   0x4   :  { %13 = vsyncpa [#allocation7], 0 }
   0x5   :  { %15 = vsyncpa [#allocation7 + $0x1], 0 }
   0x6   :  { %16 = vsyncpa [#allocation10], 0 }
   0x7   :  { %18 = vsyncpa [#allocation10 + $0x1], 0 }
   0x8   :  { %19 = vsyncpa [#allocation5], 0  ;;  %s1485_s24 = smov 0   ;;  %s1487_s25 = smov 0  }
   0x9   :  { %s1489_s26 = smov 0   ;;  %s1491_s27 = smov 0  }
   0xa   :  { %s1493_s28 = smov 0   ;;  %s1495_s29 = smov 0  }
   0xb LB: > { %s34_s30 = sadd.s32 1, %s1426_s28  ;;  %s70_s8 = sadd.s32 1, %s1418_s26  ;;  %s1430_s29 = sphi %s1495_s29, %s25_s29   ;;  %s1426_s28 = sphi %s1493_s28, %s1800_s28   ;;  %s1422_s27 = sphi %s1491_s27, %s1799_s27   ;;  %s1418_s26 = sphi %s1489_s26, %s1798_s26   ;;  %s1414_s25 = sphi %s1487_s25, %s1797_s25   ;;  %s1410_s24 = sphi %s1485_s24, %s1796_s24  }
   0xc   : > { %p35_p0 = scmp.ge.s32.totalorder %s34_s30, 2  ;;  %p77_p1 = scmp.ne.s32.totalorder %s1418_s26, %s1414_s25 }
   0xd   : > { %p78_p2 = scmp.eq.s32.totalorder %s1430_s29, 0  ;;  %p1143_p5 = scmp.lt.s32.totalorder %s1430_s29, 2 }
   0xe   : > { %s1802_s30 = smov (%p35_p0, %s34_s30), 0  ;;  %s277_s11 = sand.u32 1, %s1430_s29  }
   0xf   : > { %1784 = sst [smem:[#allocation16_spill]] %s1802_s30  ;;  %p1522_p3 = por %p78_p2, %p77_p1 }
  0x10   : > { %s67_s10 = ssub.s32 %s1426_s28, %s1802_s30  ;;  %s1777_s12 = sand.u32 1, %s1418_s26  }
  0x11   : > { %p68_p4 = scmp.eq.s32.totalorder %s67_s10, 0  ;;  %s1536_s14 = sshll.u32 %s1777_s12, 6 }
  0x12   : > { %s972_s15 = sshll.u32 %s1426_s28, 6  ;;  %s1786_s1 = sld [smem:[#allocation17_spill]] }
  0x13   : > { %s1532_s13 = scalar_select %p68_p4, %s1418_s26, %s70_s8  }
  0x14   : > { %s281_s19 = scalar_lea.vmem [#allocation6], %s1536_s14  ;;  %p1545_p6 = pnand %p1143_p5, %p1522_p3 }
  0x15   : > { %s287_s20 = sshll.u32 %s281_s19, 4  ;;  %s1788_s3 = sld [smem:[#allocation18_spill]]  ;;  %s288_s20 = int_to_ptr.vmem [resolvable:$true] %s287_s20 }
  0x16   : > { %s1554_s10 = scalar_lea.sflag [#allocation7], %s277_s11  ;;  %p1236_p7 = pneg %p1545_p6 }
  0x17   : > { %s1247_s16 = scalar_lea.vmem %s288_s20, 1024  ;;  %s1432_s9 = smov [#allocation6]  }
  0x18   : > { %s286_s18 = scalar_lea.hbm %s1786_s1, %s972_s15  ;;  %p1248_p8 = scmp.ne.s32.totalorder %s288_s20, %s1247_s16 }
  0x19   : > { %s1252_s17 = sshll.u32 %s1432_s9, 4  ;;  %s1253_s17 = int_to_ptr.vmem [resolvable:$false] %s1252_s17 }
  0x1a   : > { %p1250_p9 = pnand %p1248_p8, %p1236_p7  ;;  %s1254_s19 = scalar_lea.vmem %s1253_s17, 2048 }
  0x1b   : > { %s1552_s8 = scalar_lea.hbm %s1788_s3, %s972_s15  ;;  %p1255_p11 = scmp.lt.s32.totalorder %s288_s20, %s1253_s17 }
  0x1c   : > { %p1251_p10 = pneg %p1250_p9  ;;  %p1256_p12 = scmp.lt.s32.totalorder %s1254_s19, %s1247_s16 }
  0x1e   : > { %p1257_p13 = por %p1256_p12, %p1255_p11 }
  0x20   : > { %p1258_p0 = pnand %p1257_p13, %p1251_p10 }
  0x22   : > { %1261 = shalt.err (!%p1258_p0)
}
  0x23   : > { %s1778_s15 = smov 128   ;;  %s1779_s11 = smov 64  }
  0x24   : > { %s1435_s22 = smov 4   ;;  %s1568_s23 = sadd.s32 4294967295, %s1430_s29  }
  0x25   : > { %1135 = dma.hbm_to_vmem [thread:$0]  (!%p1545_p6), %s286_s18, 1024, %s288_s20, %s1554_s10, %s1778_s15, %s1779_s11, %s1435_s22  }
  0x26   : > { %p83_p1 = scmp.ne.s32.totalorder %s1414_s25, %s1410_s24  ;;  %p84_p2 = scmp.eq.s32.totalorder %s1568_s23, 0 }
  0x27   : > { %p968_p3 = scmp.ge.s32.totalorder %s1430_s29, 1  ;;  %p245_p4 = scmp.lt.s32.totalorder %s1430_s29, 3 }
  0x28   : > { %p1577_p5 = por %p84_p2, %p83_p1  ;;  %s1436_s18 = smov [#allocation3]  }
  0x29   : > { %p1581_p8 = pnand %p968_p3, %p245_p4  ;;  %s260_s20 = sshll.u32 %s1436_s18, 4  ;;  %s1587_s20 = int_to_ptr.vmem [resolvable:$true] %s260_s20 }
  0x2a   : > { %s307_s24 = scalar_lea.vmem [#allocation8], %s1536_s14  ;;  %s1437_s15 = smov [#allocation8]  }
  0x2b   : > { %p1128_p9 = pneg %p1581_p8  ;;  %s313_s17 = sshll.u32 %s307_s24, 4  ;;  %s314_s17 = int_to_ptr.vmem [resolvable:$true] %s313_s17 }
  0x2c   : > { %s1275_s12 = scalar_lea.vmem %s314_s17, 1024  ;;  %s1280_s18 = sshll.u32 %s1437_s15, 4  ;;  %s1281_s18 = int_to_ptr.vmem [resolvable:$false] %s1280_s18 }
  0x2d   : > { %p1592_p10 = pnand %p1128_p9, %p84_p2  ;;  %p1276_p11 = scmp.ne.s32.totalorder %s314_s17, %s1275_s12 }
  0x2e   : > { %s1282_s11 = scalar_lea.vmem %s1281_s18, 2048  ;;  %p1283_p0 = scmp.lt.s32.totalorder %s314_s17, %s1281_s18 }
  0x2f   : > { %p1278_p12 = pnand %p1276_p11, %p1236_p7  ;;  %p1284_p1 = scmp.lt.s32.totalorder %s1282_s11, %s1275_s12 }
  0x31   : > { %p1279_p13 = pneg %p1278_p12  ;;  %p1285_p3 = por %p1284_p1, %p1283_p0 }
  0x33   : > { %p1286_p4 = pnand %p1285_p3, %p1279_p13 }
  0x35   : > { %1289 = shalt.err (!%p1286_p4)
}
  0x36   : > { %s1792_s24 = smov 64   ;;  %s1793_s1 = smov 128  }
  0x37   : > { %1138 = dma.hbm_to_vmem [thread:$0]  (!%p1545_p6), %s1552_s8, 1024, %s314_s17, %s1554_s10, %s1793_s1, %s1792_s24, %s1435_s22  }
  0x38   : > { %p1292_p9 = pneg %p1592_p10  ;;  %s1301_s15 = scalar_lea.vmem %s1587_s20, 128 }
  0x39   : > { %p1302_p11 = scmp.ne.s32.totalorder %s1587_s20, %s1301_s15  ;;  %p1309_p13 = scmp.lt.s32.totalorder %s1587_s20, %s1587_s20 }
  0x3a   : > { %p1310_p1 = scmp.lt.s32.totalorder %s1301_s15, %s1301_s15 }
  0x3b   : > { %p1304_p12 = pnand %p1302_p11, %p1292_p9 }
  0x3c   : > { %p1311_p3 = por %p1310_p1, %p1309_p13 }
  0x3d   : > { %p1305_p0 = pneg %p1304_p12 }
  0x3f   : > { %p1312_p4 = pnand %p1311_p3, %p1305_p0 }
  0x41   : > { %1315 = shalt.err (!%p1312_p4)
}
  0x42   : > { %1131 = dma.hbm_to_vmem [thread:$0]  (!%p1592_p10), %s1769_s0, 128, %s1587_s20, [#allocation4], %s1792_s24, %s1792_s24, %s1435_s22  }
  0x43   : > { %s1019_s8 = sshll.u32 %s1426_s28, 10  ;;  %s333_s10 = scalar_lea.vmem [#allocation9], %s1536_s14 }
  0x44   : > { %s340_s11 = sshll.u32 %s333_s10, 4  ;;  %s339_s15 = scalar_lea.hbm %s1774_s5, %s1019_s8  ;;  %s341_s11 = int_to_ptr.vmem [resolvable:$true] %s340_s11 }
  0x45   : > { %s1794_s19 = sand.u32 1, %s1418_s26   ;;  %s1329_s30 = scalar_lea.vmem %s341_s11, 1024 }
  0x46   : > { %s330_s3 = scalar_lea.sflag [#allocation10], %s1794_s19  ;;  %p1330_p9 = scmp.ne.s32.totalorder %s341_s11, %s1329_s30 }
  0x47   : > { %s1438_s12 = smov [#allocation9]  }
  0x48   : > { %p1332_p11 = pnand %p1330_p9, %p1236_p7  ;;  %s1334_s1 = sshll.u32 %s1438_s12, 4  ;;  %s1335_s1 = int_to_ptr.vmem [resolvable:$false] %s1334_s1 }
  0x49   : > { %s1336_s20 = scalar_lea.vmem %s1335_s1, 2048  ;;  %p1337_p10 = scmp.lt.s32.totalorder %s341_s11, %s1335_s1 }
  0x4a   : > { %p1333_p12 = pneg %p1332_p11  ;;  %p1338_p0 = scmp.lt.s32.totalorder %s1336_s20, %s1329_s30 }
  0x4c   : > { %p1339_p13 = por %p1338_p0, %p1337_p10 }
  0x4e   : > { %p1340_p1 = pnand %p1339_p13, %p1333_p12 }
  0x50   : > { %1343 = shalt.err (!%p1340_p1)
}
  0x51   : > { %1141 = dma.hbm_to_vmem [thread:$0]  (!%p1545_p6), %s339_s15, 1024, %s341_s11, %s330_s3, %s1792_s24, %s1792_s24, %s1435_s22  }
  0x52   : > { %352 = sbr.rel (%p1581_p8) target bundleno = 589 (0x24d), region = 48 }
  0x57   : > { %1393 = dma.done.wait (%p84_p2), [#allocation4], 128  }
  0x58   : > { %1395 = vsyncadd (%p84_p2), [#allocation4], 4294967168  ;;  %s358_s30 = sand.u32 1, %s1568_s23   ;;  %s360_s14 = sand.u32 1, %s1414_s25  }
  0x59   : > { %s980_s8 = sshll.u32 %s360_s14, 6  ;;  %s359_s21 = scalar_lea.sflag [#allocation7], %s358_s30 }
  0x5a   : > { %s1644_s10 = scalar_lea.vmem [#allocation6], %s980_s8 }
  0x5b   : > { %1397 = dma.done.wait (%p1577_p5), %s359_s21, 2048  }
  0x5c   : > { %1399 = vsyncadd (%p1577_p5), %s359_s21, 4294965248  ;;  %s1650_s3 = scalar_lea.vmem [#allocation8], %s980_s8  ;;  %s377_s22 = scalar_lea.sflag [#allocation10], %s360_s14 }
  0x5d   : > { %s1652_s9 = scalar_lea.vmem [#allocation9], %s980_s8 }
  0x5e   : > { %1401 = dma.done.wait (%p1577_p5), %s377_s22, 1024  }
  0x5f   : > { %1403 = vsyncadd (%p1577_p5), %s377_s22, 4294966272  ;;  %p423_p6 = scmp.lt.s32.totalorder %s1422_s27, 1  ;;  %p983_p7 = scmp.ne.s32.totalorder %s1422_s27, 0 }
  0x61   : > { %s1660_s24 = scalar_select %p423_p6, %s1422_s27, 1 }
  0x62   : > { %435 = sbr.rel (%p983_p7) target bundleno = 105 (0x69), region = 68 }
  0x63   : > { %s425_s18 = scalar_lea.vmem %s1771_s2, %s1660_s24  ;;  %s428_s12 = scalar_lea.vmem %s1773_s4, %s1660_s24 }
  0x67   : > { %v1439_v0 = vmov 0.0  }
  0x68   : > { %436 = vst [vmem:[#allocation2] sm:$0xff] %v1439_v0  ;;  %437 = vst [vmem:[#allocation2 + $0x8] sm:$0xff] %v1439_v0 }
  0x69 PF: > { %v1205_v1 = vld [vmem:[%s1644_s10 + $0x38] sm:$0xff]   ;;  %v1440_v2 = vmov 0.0   ;;  %v1206_v3 = vld [vmem:[%s1644_s10 + $0x30] sm:$0xff]   ;;  %vm1441_vm0 = vmmov 0   ;;  %v1207_v5 = vld [vmem:[%s1644_s10 + $0x28] sm:$0xff]   ;;  %p1011_p2 = scmp.ne.s32.totalorder %s1422_s27, 1 }
  0x6a   : > { %1054 = vmatprep.subr.bf16.mxu0 %v1440_v2  ;;  %1074 = vmatprep.subr.bf16.mxu1 %v1440_v2  ;;  %v1209_v4 = vld [vmem:[%s1650_s3 + $0x38] sm:$0xff]   ;;  %v1211_v6 = vld [vmem:[%s1650_s3 + $0x30] sm:$0xff]   ;;  %v1208_v7 = vld [vmem:[%s1644_s10 + $0x20] sm:$0xff]  }
  0x6b   : > { %1055 = vmatpush3.bf16.msra.mxu0 %v1205_v1  ;;  %1070 = vmatprep.mubr.msk.bf16.mxu0 %vm1441_vm0, %v1440_v2  ;;  %v1213_v8 = vld [vmem:[%s1650_s3 + $0x28] sm:$0xff]   ;;  %v1210_v9 = vld [vmem:[%s1644_s10 + $0x18] sm:$0xff]   ;;  %v1215_v10 = vld [vmem:[%s1650_s3 + $0x20] sm:$0xff]  }
  0x6c   : > { %1056 = vmatprep.subr.bf16.mxu0 %v1440_v2  ;;  %1090 = vmatprep.mubr.msk.bf16.mxu1 %vm1441_vm0, %v1440_v2  ;;  %v1212_v11 = vld [vmem:[%s1644_s10 + $0x10] sm:$0xff]   ;;  %v1217_v12 = vld [vmem:[%s1650_s3 + $0x18] sm:$0xff]   ;;  %v1214_v13 = vld [vmem:[%s1644_s10 + $0x8] sm:$0xff]  }
  0x6d   : > { %1075 = vmatpush3.bf16.msra.mxu1 %v1209_v4  ;;  %v1219_v14 = vld [vmem:[%s1650_s3 + $0x10] sm:$0xff]   ;;  %v1216_v15 = vld [vmem:[%s1644_s10] sm:$0xff]   ;;  %v1220_v16 = vld [vmem:[%s1650_s3 + $0x8] sm:$0xff]  }
  0x6e   : > { %1076 = vmatprep.subr.bf16.mxu1 %v1440_v2  ;;  %v1218_v17 = vld [vmem:[#allocation3] sm:$0xff]   ;;  %v1221_v18 = vld [vmem:[%s1650_s3] sm:$0xff]   ;;  %v1223_v20 = vld [vmem:[%s1652_s9 + $0x30] sm:$0xff]  }
  0x6f   : > { %1057 = vmatpush3.bf16.msra.mxu0 %v1206_v3  ;;  %v1222_v19 = vld [vmem:[%s1652_s9 + $0x38] sm:$0xff]   ;;  %v1224_v21 = vld [vmem:[%s1652_s9 + $0x28] sm:$0xff]   ;;  %v1225_v22 = vld [vmem:[%s1652_s9 + $0x20] sm:$0xff]  }
  0x70   : > { %1058 = vmatprep.subr.bf16.mxu0 %v1440_v2  ;;  %v1226_v23 = vld [vmem:[%s1652_s9 + $0x18] sm:$0xff]   ;;  %v1227_v24 = vld [vmem:[%s1652_s9 + $0x10] sm:$0xff]   ;;  %v1228_v25 = vld [vmem:[%s1652_s9 + $0x8] sm:$0xff]  }
  0x71   : > { %1077 = vmatpush3.bf16.msra.mxu1 %v1211_v6  ;;  %v1229_v26 = vld [vmem:[%s1652_s9] sm:$0xff]   ;;  %v984_v27 = vld [vmem:[%s425_s18] ss:$0 sm:$0xff]  ;;  %v684_v58 = vld [vmem:[#allocation2 + $0x8] sm:$0xff] }
  0x72   : > { %1078 = vmatprep.subr.bf16.mxu1 %v1440_v2  ;;  %v994_v42 = vld [vmem:[%s428_s12] ss:$0 sm:$0xff] }
  0x73   : > { %1059 = vmatpush3.bf16.msra.mxu0 %v1207_v5  ;;  %v683_v54 = vld [vmem:[#allocation2] sm:$0xff] }
  0x74   : > { %1060 = vmatprep.subr.bf16.mxu0 %v1440_v2 }
  0x75   : > { %1079 = vmatpush3.bf16.msra.mxu1 %v1213_v8 }
  0x76   : > { %1080 = vmatprep.subr.bf16.mxu1 %v1440_v2 }
  0x77   : > { %1061 = vmatpush3.bf16.msra.mxu0 %v1208_v7 }
  0x78   : > { %1062 = vmatprep.subr.bf16.mxu0 %v1440_v2 }
  0x79   : > { %1081 = vmatpush3.bf16.msra.mxu1 %v1215_v10 }
  0x7a   : > { %1082 = vmatprep.subr.bf16.mxu1 %v1440_v2 }
  0x7b   : > { %1063 = vmatpush3.bf16.msra.mxu0 %v1210_v9 }
  0x7c   : > { %1064 = vmatprep.subr.bf16.mxu0 %v1440_v2 }
  0x7d   : > { %1083 = vmatpush3.bf16.msra.mxu1 %v1217_v12 }
  0x7e   : > { %1084 = vmatprep.subr.bf16.mxu1 %v1440_v2 }
  0x7f   : > { %1065 = vmatpush3.bf16.msra.mxu0 %v1212_v11 }
  0x80   : > { %1066 = vmatprep.subr.bf16.mxu0 %v1440_v2 }
  0x81   : > { %1085 = vmatpush3.bf16.msra.mxu1 %v1219_v14 }
  0x82   : > { %1086 = vmatprep.subr.bf16.mxu1 %v1440_v2 }
  0x83   : > { %1067 = vmatpush3.bf16.msra.mxu0 %v1214_v13 }
  0x84   : > { %1068 = vmatprep.subr.bf16.mxu0 %v1440_v2 }
  0x85   : > { %1087 = vmatpush3.bf16.msra.mxu1 %v1220_v16 }
  0x86   : > { %1088 = vmatprep.subr.bf16.mxu1 %v1440_v2 }
  0x87   : > { %1069 = vmatpush3.bf16.msra.mxu0 %v1216_v15 }
  0x88   : > { %1094 = vmatprep.subr.bf16.mxu0 %v1440_v2 }
  0x89   : > { %1089 = vmatpush3.bf16.msra.mxu1 %v1221_v18 }
  0x8a   : > { %1071 = vmatmul.mubr.bf16.vlgmr.msra.gmra.mxu0 %v1218_v17 }
  0x8b   : > { %1110 = vmatprep.mubr.msk.bf16.mxu0 %vm1441_vm0, %v1440_v2  ;;  %1095 = vmatpush3.bf16.msra.mxu0 %v1222_v19 }
  0x8c   : > { %1091 = vmatmul.mubr.bf16.vlgmr.msra.gmra.mxu1 %v1218_v17  ;;  %1096 = vmatprep.subr.bf16.mxu0 %v1440_v2 }
  0x8f   : > { %1097 = vmatpush3.bf16.msra.mxu0 %v1223_v20 }
  0x90   : > { %1098 = vmatprep.subr.bf16.mxu0 %v1440_v2 }
  0x93   : > { %1099 = vmatpush3.bf16.msra.mxu0 %v1224_v21 }
  0x94   : > { %1100 = vmatprep.subr.bf16.mxu0 %v1440_v2 }
  0x97   : > { %1101 = vmatpush3.bf16.msra.mxu0 %v1225_v22 }
  0x98   : > { %1102 = vmatprep.subr.bf16.mxu0 %v1440_v2 }
  0x9b   : > { %1103 = vmatpush3.bf16.msra.mxu0 %v1226_v23 }
  0x9c   : > { %1104 = vmatprep.subr.bf16.mxu0 %v1440_v2 }
  0x9f   : > { %1105 = vmatpush3.bf16.msra.mxu0 %v1227_v24 }
  0xa0   : > { %1106 = vmatprep.subr.bf16.mxu0 %v1440_v2 }
  0xa3   : > { %1107 = vmatpush3.bf16.msra.mxu0 %v1228_v25 }
  0xa4   : > { %1108 = vmatprep.subr.bf16.mxu0 %v1440_v2 }
  0xa7   : > { %1109 = vmatpush3.bf16.msra.mxu0 %v1229_v26 }
 0x14a   : > { %v551_v28 = vpop.f32.mrf.mxu0 }
 0x14b   : > { %v552_v29 = vadd.f32 %v984_v27, %v551_v28 }
 0x14c   : > { %v1072_v30 = vpop.f32.mrf.mxu0  ;;  %v663_v33 = vpop.f32.mrf.mxu1 }
 0x14d   : > { %v672_v31 = vmul.f32 0.70710677, %v552_v29  ;;  %v670_v43 = vmul.f32 0.5, %v552_v29  ;;  %v664_v46 = vadd.f32 %v994_v42, %v663_v33 }
 0x14e   : > { %v554_v32 = vpop.f32.mrf.mxu0  ;;  %v1092_v36 = vpop.f32.mrf.mxu1 }
 0x14f   : > { %1230 = verf.f32 %v672_v31  ;;  %v555_v34 = vadd.f32 %v984_v27, %v554_v32 }
 0x150   : > { %v1073_v35 = vpop.f32.mrf.mxu0  ;;  %v666_v38 = vpop.f32.mrf.mxu1 }
 0x151   : > { %v673_v37 = vmul.f32 0.70710677, %v555_v34  ;;  %v671_v45 = vmul.f32 0.5, %v555_v34  ;;  %v667_v49 = vadd.f32 %v994_v42, %v666_v38 }
 0x152   : > { %v1093_v39 = vpop.f32.mrf.mxu1 }
 0x153   : > { %1232 = verf.f32 %v673_v37 }
 0x15c   : > { %v1231_v40 = vpop.eup %1230 }
 0x15d   : > { %v676_v41 = vadd.f32 1.0, %v1231_v40 }
 0x15f   : > { %v678_v47 = vmul.f32 %v676_v41, %v670_v43 }
 0x160   : > { %v1233_v44 = vpop.eup %1232 }
 0x161   : > { %v677_v48 = vadd.f32 1.0, %v1233_v44  ;;  %v680_v51 = vmul.f32 %v678_v47, %v664_v46 }
 0x163   : > { %v679_v50 = vmul.f32 %v677_v48, %v671_v45 }
 0x165   : > { %v681_v52 = vmul.f32 %v679_v50, %v667_v49 }
 0x167   : > { %v682_v53 = vpack.c.bf16 %v681_v52, %v680_v51 }
 0x169   : > { %1111 = vmatmul.mubr.bf16.vlgmr.msra.gmra.mxu0 %v682_v53 }
 0x229   : > { %v783_v55 = vpop.f32.mrf.mxu0 }
 0x22a   : > { %v790_v56 = vadd.f32 %v783_v55, %v683_v54 }
 0x22b   : > { %v1112_v57 = vpop.f32.mrf.mxu0 }
 0x22c   : > { %792 = vst [vmem:[#allocation2] sm:$0xff] %v790_v56  ;;  %797 = sbr.rel (%p1011_p2) target bundleno = 573 (0x23d), region = 72 }
 0x22d   : > { %v786_v59 = vpop.f32.mrf.mxu0 }
 0x22e   : > { %v791_v60 = vadd.f32 %v786_v59, %v684_v58 }
 0x22f   : > { %v1113_v61 = vpop.f32.mrf.mxu0 }
 0x230   : > { %793 = vst [vmem:[#allocation2 + $0x8] sm:$0xff] %v791_v60 }
 0x231   : > { %v1012_v0 = vld [vmem:[%s1775_s6] ss:$0 sm:$0xff] }
 0x233   : > { %v798_v62 = vld [vmem:[#allocation2] sm:$0xff] }
 0x234   : > { %v807_v1 = vadd.f32 %v1012_v0, %v798_v62 }
 0x237   : > { %v799_v63 = vld [vmem:[#allocation2 + $0x8] sm:$0xff] }
 0x238   : > { %v808_v2 = vadd.f32 %v1012_v0, %v799_v63 }
 0x23a   : > { %v1025_v3 = vpack.c.bf16 %v808_v2, %v807_v1 }
 0x23c   : > { %1026 = vst [vmem:[#allocation11] sm:$0xff] %v1025_v3  }
 0x23d PF: > { %p1145_p5 = scmp.eq.s32.totalorder %s1568_s23, 1  ;;  %s1442_s21 = smov [#allocation11]  }
 0x23e   : > { %s828_s10 = sshll.u32 %s1442_s21, 4  ;;  %s829_s10 = int_to_ptr.vmem [resolvable:$true] %s828_s10 }
 0x23f   : > { %s1344_s3 = scalar_lea.vmem %s829_s10, 128  ;;  %p1351_p9 = scmp.lt.s32.totalorder %s829_s10, %s829_s10 }
 0x240   : > { %p1345_p8 = scmp.ne.s32.totalorder %s829_s10, %s1344_s3  ;;  %p1352_p11 = scmp.lt.s32.totalorder %s1344_s3, %s1344_s3 }
 0x242   : > { %p1346_p3 = pnand %p1345_p8, %p1145_p5  ;;  %p1353_p12 = por %p1352_p11, %p1351_p9 }
 0x244   : > { %p1347_p4 = pneg %p1346_p3 }
 0x246   : > { %p1354_p10 = pnand %p1353_p12, %p1347_p4 }
 0x248   : > { %1357 = shalt.err (!%p1354_p10)
}
 0x249   : > { %s1443_s27 = smov 64   ;;  %s1444_s22 = smov 4  }
 0x24a   : > { %1125 = dma.vmem_to_hbm [thread:$0]  (%p1145_p5), %s829_s10, 128, %s1776_s7, [#allocation5], %s1443_s27, %s1443_s27, %s1444_s22  }
 0x24b   : > { %1405 = dma.done.wait (%p1145_p5), [#allocation5], 128  }
 0x24c   : > { %1407 = vsyncadd (%p1145_p5), [#allocation5], 4294967168 }
 0x24d PF: > { %s25_s29 = sadd.s32 1, %s1430_s29   ;;  %s1795_s11 = sld [smem:[#allocation16_spill]] }
 0x24e   : > { %p22_p0 = scmp.ge.s32.totalorder %s25_s29, 4   ;;  %s1796_s24 = smov %s1414_s25 }
 0x24f   : > { %s1797_s25 = smov %s1418_s26  ;;  %s1798_s26 = smov %s1532_s13 }
 0x250   : > { %s1799_s27 = smov %s1426_s28  ;;  %24 = sbr.rel (!%p22_p0) target bundleno = 11 (0xb), region = 130 }
 0x253   : > { %s1800_s28 = smov %s1795_s11 }
 0x255   :  { %844 = vsyncpa [#allocation4], 1 }
 0x256   :  { %846 = vsyncpa [#allocation4 + $0x1], 1 }
 0x257   :  { %847 = vsyncpa [#allocation7], 1 }
 0x258   :  { %849 = vsyncpa [#allocation7 + $0x1], 1 }
 0x259   :  { %850 = vsyncpa [#allocation10], 1 }
 0x25a   :  { %852 = vsyncpa [#allocation10 + $0x1], 1 }
 0x25b   :  { %853 = vsyncpa [#allocation5], 1 }
 0x25c   :  { %855 = vsyncpa [#allocation5 + $0x1], 1 }

</bundles_post_ra>
